<compile_context>
chip_gen: v7x
topology: tpu7x:2x2x1
jax: 0.10.0
libtpu: 0.0.40
codegen_flags: <defaults>
</compile_context>

<pallas_src>
import jax
import jax.numpy as jnp
import numpy as np
from jax.experimental import pallas as pl
from jax.experimental.pallas import tpu as pltpu


# ------------------------- hardware-aware constants --------------------------


def _vmem_capacity_bytes():
    try:
        return int(pltpu.get_tpu_info().vmem_capacity_bytes)
    except Exception:
        return 64 * 1024 * 1024            # conservative (v7x-sized) default


_VMEM_CAPACITY = _vmem_capacity_bytes()
# ~38 MiB on 64 MiB parts (v7x), ~76 MiB on 128 MiB parts (v5e/v6e).
_VMEM_LIMIT = int(min(96 << 20, max(32 << 20, (_VMEM_CAPACITY * 3) // 5)))
_VMEM_BUDGET = _VMEM_LIMIT // 2            # per-step tile budget (headroom)

_COMPILER_PARAMS = pltpu.CompilerParams(
    dimension_semantics=("parallel",),
    vmem_limit_bytes=_VMEM_LIMIT,
)


# ------------------------------ tiling helpers --------------------------------


def _round_up(x, m):
    return ((x + m - 1) // m) * m


def _cdiv(a, b):
    return -(-a // b)


def _row_cap(bytes_per_row, budget_bytes, hard_cap):
    """Largest row tile (multiple of 8, <= hard_cap) whose per-step VMEM
    footprint stays inside `budget_bytes`."""
    cap = budget_bytes // max(1, bytes_per_row)
    cap = (min(hard_cap, cap) // 8) * 8
    return max(8, cap)


def _choose_tile(n, cap, min_steps=4):
    """Row tile (multiple of 8, <= cap) and padded row count (multiple of it).

    Targets >= min_steps grid steps (>= 2 per TensorCore on dual-TC parts) so
    megacore sharding and DMA/compute overlap both engage, while keeping the
    padding waste small when the cap binds."""
    steps = max(min_steps, _cdiv(n, cap))
    tn = min(cap, max(8, _round_up(_cdiv(n, steps), 8)))
    n_pad = _round_up(n, tn)
    return tn, n_pad


# ------------------------------ Pallas kernels --------------------------------


def _jk_cat_kernel(*refs):
    # refs: x_0 .. x_{T-1} each (TN, C); o_ref (TN, T*C).
    # One lane-dense, unmasked store of the whole concatenated block.
    *x_refs, o_ref = refs
    o_ref[...] = jnp.concatenate([r[...] for r in x_refs], axis=-1)


def _jk_max_kernel(*refs):
    # refs: x_0 .. x_{T-1} each (TN, C); o_ref (TN, C). Pure VPU max.
    *x_refs, o_ref = refs
    acc = x_refs[0][...]
    for r in x_refs[1:]:
        acc = jnp.maximum(acc, r[...])
    o_ref[...] = acc


def _jk_lstm_kernel(*refs):
    # refs: x_0 .. x_{T-1}             each (TN, C)
    #       w     (2H+2C, 8H) bf16     fused [hidden ; input] -> gate weights,
    #                                  rows: [h_fwd|h_bwd | x_fwd | x_bwd],
    #                                  cols: [i_f|i_b | f_f|f_b | g_f|g_b | o_f|o_b]
    #       b     (1, 8H)  f32         combined biases (same column packing)
    #       attw  (1, 2H)  f32         attention weights for [h_fwd | h_bwd]
    #       o_ref (TN, C)
    T = len(refs) - 4
    x_refs = refs[:T]
    w_ref, b_ref, attw_ref, o_ref = refs[T:]

    TN, _ = x_refs[0].shape
    H2 = attw_ref.shape[1]                                  # 2H
    H = H2 // 2

    w = w_ref[...]                                          # (2H+2C, 8H) bf16
    b = b_ref[...]                                          # (1, 8H)     f32
    attw = attw_ref[...]                                    # (1, 2H)     f32

    # Layer inputs cast once to bf16 for the MXU (tiny: T * TN * C * 2 B).
    xb = [x_refs[t][...].astype(jnp.bfloat16) for t in range(T)]

    h = jnp.zeros((TN, H2), jnp.float32)                    # [h_fwd | h_bwd]
    c = jnp.zeros((TN, H2), jnp.float32)
    s_fwd = [None] * T
    s_bwd = [None] * T
    for s in range(T):
        # Fused hidden + input projection: one bf16 matmul, f32 accumulation.
        inp = jnp.concatenate(
            [h.astype(jnp.bfloat16), xb[s], xb[T - 1 - s]], axis=-1)
        g = jnp.dot(inp, w, preferred_element_type=jnp.float32) + b  # (TN, 8H)
        i_g = jax.nn.sigmoid(g[:, 0 * H2:1 * H2])           # 128-lane slices
        f_g = jax.nn.sigmoid(g[:, 1 * H2:2 * H2])
        g_g = jnp.tanh(g[:, 2 * H2:3 * H2])
        o_g = jax.nn.sigmoid(g[:, 3 * H2:4 * H2])
        c = f_g * c + i_g * g_g
        h = o_g * jnp.tanh(c)
        # Per-layer attention partial scores; hidden states are not kept live.
        hw = h * attw
        s_fwd[s] = jnp.sum(hw[:, :H], axis=-1, keepdims=True)
        s_bwd[T - 1 - s] = jnp.sum(hw[:, H:], axis=-1, keepdims=True)

    # Attention-bias term is constant across t and cancels in the softmax.
    scores = [s_fwd[t] + s_bwd[t] for t in range(T)]

    # Numerically-stable softmax over the T layer scores.
    m = scores[0]
    for t in range(1, T):
        m = jnp.maximum(m, scores[t])
    exps = [jnp.exp(s - m) for s in scores]
    denom = exps[0]
    for t in range(1, T):
        denom = denom + exps[t]
    inv = pl.reciprocal(denom, approx=True)
    inv = inv * (2.0 - denom * inv)     # one Newton step -> full f32 accuracy

    # Weighted sum of the layer representations in f32 (re-read refs; cheap vld).
    acc = x_refs[0][...].astype(jnp.float32) * (exps[0] * inv)
    for t in range(1, T):
        acc = acc + x_refs[t][...].astype(jnp.float32) * (exps[t] * inv)
    o_ref[...] = acc.astype(o_ref.dtype)


# ------------------------------ Module wrapper --------------------------------


class JumpingKnowledge:
    def __init__(self, mode, channels=None, num_layers=None, key=None):
        self.mode = mode.lower()
        assert self.mode in ('cat', 'max', 'lstm')
        if self.mode == 'lstm':
            assert channels is not None, 'channels cannot be None for lstm'
            assert num_layers is not None, 'num_layers cannot be None for lstm'
            assert (num_layers * channels) % 2 == 0, \
                'num_layers * channels must be even for lstm mode'
            self.channels = channels
            self.num_layers = num_layers
            H = num_layers * channels // 2
            self.hidden = H
            k = key if key is not None else jax.random.PRNGKey(0)
            ks = jax.random.split(k, 10)
            bound = 1.0 / np.sqrt(H)

            def u(kk, shape, b):
                return jax.random.uniform(kk, shape, jnp.float32, -b, b)

            # PyTorch LSTM parameter shapes (gate order i, f, g, o).
            self.w_ih_f = u(ks[0], (4 * H, channels), bound)
            self.w_hh_f = u(ks[1], (4 * H, H), bound)
            self.b_ih_f = u(ks[2], (4 * H,), bound)
            self.b_hh_f = u(ks[3], (4 * H,), bound)
            self.w_ih_b = u(ks[4], (4 * H, channels), bound)
            self.w_hh_b = u(ks[5], (4 * H, H), bound)
            self.b_ih_b = u(ks[6], (4 * H,), bound)
            self.b_hh_b = u(ks[7], (4 * H,), bound)
            ab = 1.0 / np.sqrt(2 * H)
            self.att_w = u(ks[8], (1, 2 * H), ab)   # Linear(2H, 1) weight
            self.att_b = u(ks[9], (1,), ab)         # Linear(2H, 1) bias
            self._pack_lstm_weights()
        else:
            self.channels = None
            self.num_layers = None

    def _pack_lstm_weights(self):
        # Fuse both directions AND the input projection into a single
        # (2H+2C, 8H) weight. Row layout: [h_fwd | h_bwd | x_fwd | x_bwd];
        # column layout: [i_f|i_b | f_f|f_b | g_f|g_b | o_f|o_b], so with H a
        # multiple of 64 every gate slice in the kernel spans full 128-lane
        # vregs. Stored in bf16 (MXU-native) with f32 biases.
        H, C = self.hidden, self.channels
        w = np.zeros((2 * H + 2 * C, 8 * H), np.float32)
        b = np.zeros((8 * H,), np.float32)
        w_ih_f = np.asarray(self.w_ih_f)
        w_hh_f = np.asarray(self.w_hh_f)
        w_ih_b = np.asarray(self.w_ih_b)
        w_hh_b = np.asarray(self.w_hh_b)
        b_f = np.asarray(self.b_ih_f) + np.asarray(self.b_hh_f)
        b_b = np.asarray(self.b_ih_b) + np.asarray(self.b_hh_b)
        for g in range(4):
            rows = slice(g * H, (g + 1) * H)
            col_f = slice(g * 2 * H, g * 2 * H + H)
            col_b = slice(g * 2 * H + H, (g + 1) * 2 * H)
            # hidden -> gates (block-diagonal per direction)
            w[0:H, col_f] = w_hh_f[rows, :].T
            w[H:2 * H, col_b] = w_hh_b[rows, :].T
            # input -> gates
            w[2 * H:2 * H + C, col_f] = w_ih_f[rows, :].T
            w[2 * H + C:2 * H + 2 * C, col_b] = w_ih_b[rows, :].T
            b[col_f] = b_f[rows]
            b[col_b] = b_b[rows]
        self._w_cat = jnp.asarray(w, dtype=jnp.bfloat16)      # (2H+2C, 8H)
        self._b_cat = jnp.asarray(b).reshape(1, 8 * H)        # (1, 8H) f32
        self._attw = jnp.asarray(self.att_w).reshape(1, 2 * H)

    @staticmethod
    def _pad_rows(xs, n, n_pad):
        if n_pad == n:
            return xs
        pad = n_pad - n
        return [jnp.pad(x, ((0, pad), (0, 0))) for x in xs]

    def __call__(self, xs):
        T = len(xs)
        N, C = xs[0].shape
        dtype = xs[0].dtype
        itemsize = jnp.dtype(dtype).itemsize
        assert all(x.shape == (N, C) and x.dtype == dtype for x in xs), \
            'all layer representations must share shape and dtype'

        if self.mode == 'cat':
            # double-buffered T inputs + double-buffered (T*C)-wide output
            bytes_per_row = 2 * (T * C + T * C) * itemsize
            cap = _row_cap(bytes_per_row, _VMEM_BUDGET, hard_cap=8192)
            TN, n_pad = _choose_tile(N, cap)
            xs_p = self._pad_rows(xs, N, n_pad)
            out = pl.pallas_call(
                _jk_cat_kernel,
                out_shape=jax.ShapeDtypeStruct((n_pad, T * C), dtype),
                grid_spec=pltpu.PrefetchScalarGridSpec(
                    num_scalar_prefetch=0, grid=(n_pad // TN,),
                    in_specs=[pl.BlockSpec((TN, C), lambda i: (i, 0))
                              for _ in range(T)],
                    out_specs=pl.BlockSpec((TN, T * C), lambda i: (i, 0))),
                compiler_params=_COMPILER_PARAMS,
            )(*xs_p)
            return out if n_pad == N else out[:N]

        if self.mode == 'max':
            bytes_per_row = 2 * (T * C + C) * itemsize
            cap = _row_cap(bytes_per_row, _VMEM_BUDGET, hard_cap=8192)
            TN, n_pad = _choose_tile(N, cap)
            xs_p = self._pad_rows(xs, N, n_pad)
            out = pl.pallas_call(
                _jk_max_kernel,
                out_shape=jax.ShapeDtypeStruct((n_pad, C), dtype),
                grid_spec=pltpu.PrefetchScalarGridSpec(
                    num_scalar_prefetch=0, grid=(n_pad // TN,),
                    in_specs=[pl.BlockSpec((TN, C), lambda i: (i, 0))
                              for _ in range(T)],
                    out_specs=pl.BlockSpec((TN, C), lambda i: (i, 0))),
                compiler_params=_COMPILER_PARAMS,
            )(*xs_p)
            return out if n_pad == N else out[:N]

        # lstm mode
        assert C == self.channels and T == self.num_layers
        H = self.hidden
        # Rough per-row working set: double-buffered f32 inputs/output,
        # bf16 input copies, f32 h/c state and one (TN, 8H) gate block.
        bytes_per_row = (2 * (T * C + C) * 4 + T * C * 2
                         + (2 * 2 * H + 8 * H) * 4)
        cap = _row_cap(bytes_per_row, _VMEM_BUDGET, hard_cap=1024)
        TN, n_pad = _choose_tile(N, cap)
        xs_p = self._pad_rows(xs, N, n_pad)

        full = lambda i: (0, 0)
        in_specs = ([pl.BlockSpec((TN, C), lambda i: (i, 0)) for _ in range(T)]
                    + [pl.BlockSpec((2 * H + 2 * C, 8 * H), full),
                       pl.BlockSpec((1, 8 * H), full),
                       pl.BlockSpec((1, 2 * H), full)])
        out = pl.pallas_call(
            _jk_lstm_kernel,
            out_shape=jax.ShapeDtypeStruct((n_pad, C), dtype),
            grid_spec=pltpu.PrefetchScalarGridSpec(
                num_scalar_prefetch=0, grid=(n_pad // TN,),
                in_specs=in_specs,
                out_specs=pl.BlockSpec((TN, C), lambda i: (i, 0))),
            compiler_params=_COMPILER_PARAMS,
        )(*xs_p, self._w_cat, self._b_cat, self._attw)
        return out if n_pad == N else out[:N]


# -------------------------------- References ----------------------------------


def _lstm_ref(xs, m):
    x = jnp.stack(xs, axis=1)  # [N, T, C]
    N, T, C = x.shape
    H = m.hidden

    def run_dir(w_ih, w_hh, b_ih, b_hh, reverse):
        h = jnp.zeros((N, H), jnp.float32)
        c = jnp.zeros((N, H), jnp.float32)
        outs = [None] * T
        order = range(T - 1, -1, -1) if reverse else range(T)
        for t in order:
            g = x[:, t] @ w_ih.T + b_ih + h @ w_hh.T + b_hh
            i = jax.nn.sigmoid(g[:, :H])
            f = jax.nn.sigmoid(g[:, H:2 * H])
            gg = jnp.tanh(g[:, 2 * H:3 * H])
            o = jax.nn.sigmoid(g[:, 3 * H:])
            c = f * c + i * gg
            h = o * jnp.tanh(c)
            outs[t] = h
        return jnp.stack(outs, axis=1)

    fwd = run_dir(m.w_ih_f, m.w_hh_f, m.b_ih_f, m.b_hh_f, False)
    bwd = run_dir(m.w_ih_b, m.w_hh_b, m.b_ih_b, m.b_hh_b, True)
    out = jnp.concatenate([fwd, bwd], axis=-1)          # [N, T, 2H]
    alpha = jnp.squeeze(out @ m.att_w.T, -1) + m.att_b  # [N, T]
    alpha = jax.nn.softmax(alpha, axis=-1)
    return jnp.sum(x * alpha[..., None], axis=1)        # [N, C]


# ----------------------------------- Main --------------------------------------


if __name__ == "__main__":
    key = jax.random.PRNGKey(0)
    N, C, T = 256, 32, 4
    keys = jax.random.split(key, T + 1)
    xs = [jax.random.normal(keys[t], (N, C), jnp.float32) for t in range(T)]

    # --- cat ---
    jk_cat = JumpingKnowledge('cat')
    out_cat = jax.block_until_ready(jk_cat(xs))
    ref_cat = jnp.concatenate(xs, axis=-1)
    np.testing.assert_allclose(np.asarray(out_cat), np.asarray(ref_cat),
                               rtol=1e-6, atol=1e-6)

    # --- max ---
    jk_max = JumpingKnowledge('max')
    out_max = jax.block_until_ready(jk_max(xs))
    ref_max = jnp.max(jnp.stack(xs, axis=-1), axis=-1)
    np.testing.assert_allclose(np.asarray(out_max), np.asarray(ref_max),
                               rtol=1e-6, atol=1e-6)

    # --- max, awkward row count (exercises the pad + slice path) ---
    xs_odd = [x[:250] for x in xs]
    out_odd = jax.block_until_ready(jk_max(xs_odd))
    np.testing.assert_allclose(np.asarray(out_odd),
                               np.asarray(ref_max)[:250],
                               rtol=1e-6, atol=1e-6)

    # --- lstm (bf16 MXU operands => loose tolerance vs f32 reference) ---
    jk_lstm = JumpingKnowledge('lstm', channels=C, num_layers=T, key=keys[T])
    out_lstm = jax.block_until_ready(jk_lstm(xs))
    ref_lstm = _lstm_ref(xs, jk_lstm)
    np.testing.assert_allclose(np.asarray(out_lstm), np.asarray(ref_lstm),
                               rtol=2e-2, atol=2e-2)

    print("KERNEL_OK")
</pallas_src>

<mosaic_0001>
module attributes {stable_mosaic.version = 11 : i64} {
  func.func @_jk_cat_kernel(%arg0: i32, %arg1: memref<64x32xf32, #tpu.memory_space<vmem>>, %arg2: memref<64x32xf32, #tpu.memory_space<vmem>>, %arg3: memref<64x32xf32, #tpu.memory_space<vmem>>, %arg4: memref<64x32xf32, #tpu.memory_space<vmem>>, %arg5: memref<64x128xf32, #tpu.memory_space<vmem>>) attributes {dimension_semantics = [#tpu.dimension_semantics<parallel>], iteration_bounds = array<i64: 4>, scalar_prefetch = 0 : i64, scratch_operands = 0 : i64, tpu.core_type = #tpu.core_type<tc>, window_params = [{transform_indices = @transform_0, window_bounds = array<i64: 64, 32>}, {transform_indices = @transform_1, window_bounds = array<i64: 64, 32>}, {transform_indices = @transform_2, window_bounds = array<i64: 64, 32>}, {transform_indices = @transform_3, window_bounds = array<i64: 64, 32>}, {transform_indices = @transform_4, window_bounds = array<i64: 64, 128>}]} {
    %c0 = arith.constant 0 : index
    %c0_0 = arith.constant 0 : index
    %0 = vector.load %arg1[%c0, %c0_0] : memref<64x32xf32, #tpu.memory_space<vmem>>, vector<64x32xf32>
    %c0_1 = arith.constant 0 : index
    %c0_2 = arith.constant 0 : index
    %1 = vector.load %arg2[%c0_1, %c0_2] : memref<64x32xf32, #tpu.memory_space<vmem>>, vector<64x32xf32>
    %c0_3 = arith.constant 0 : index
    %c0_4 = arith.constant 0 : index
    %2 = vector.load %arg3[%c0_3, %c0_4] : memref<64x32xf32, #tpu.memory_space<vmem>>, vector<64x32xf32>
    %c0_5 = arith.constant 0 : index
    %c0_6 = arith.constant 0 : index
    %3 = vector.load %arg4[%c0_5, %c0_6] : memref<64x32xf32, #tpu.memory_space<vmem>>, vector<64x32xf32>
    %4 = tpu.concatenate %0, %1, %2, %3 in 1 : vector<64x32xf32>, vector<64x32xf32>, vector<64x32xf32>, vector<64x32xf32> -> vector<64x128xf32>
    %c0_7 = arith.constant 0 : index
    %c0_8 = arith.constant 0 : index
    %5 = vector.load %arg5[%c0_7, %c0_8] : memref<64x128xf32, #tpu.memory_space<vmem>>, vector<64x128xf32>
    tpu.vector_store %arg5[%c0_7, %c0_8], %4 {strides = array<i32>} : memref<64x128xf32, #tpu.memory_space<vmem>>, vector<64x128xf32>,
    return
  }
  func.func @transform_0(%arg0: i32) -> (i32, i32) {
    %c0_i32 = arith.constant 0 : i32
    %c0_i32_0 = arith.constant 0 : i32
    return %arg0, %c0_i32 : i32, i32
  }
  func.func @transform_1(%arg0: i32) -> (i32, i32) {
    %c0_i32 = arith.constant 0 : i32
    %c0_i32_0 = arith.constant 0 : i32
    return %arg0, %c0_i32 : i32, i32
  }
  func.func @transform_2(%arg0: i32) -> (i32, i32) {
    %c0_i32 = arith.constant 0 : i32
    %c0_i32_0 = arith.constant 0 : i32
    return %arg0, %c0_i32 : i32, i32
  }
  func.func @transform_3(%arg0: i32) -> (i32, i32) {
    %c0_i32 = arith.constant 0 : i32
    %c0_i32_0 = arith.constant 0 : i32
    return %arg0, %c0_i32 : i32, i32
  }
  func.func @transform_4(%arg0: i32) -> (i32, i32) {
    %c0_i32 = arith.constant 0 : i32
    %c0_i32_0 = arith.constant 0 : i32
    return %arg0, %c0_i32 : i32, i32
  }
}

</mosaic_0001>

<bundles_post_ra>
// kernel: tpu_custom_call.1
= control target key start
LH: loop header
LB: loop body
LE: loop exit
PB: predicated region body
PF: predicated region fallthrough
CT: control target
= control target key end

     0   :  { %9 = vsyncpa [#allocation3], 0  ;;  %s864_s0 = inlined_call_operand.vmem [shape: f32[256,32], index: 0, kind: input, shape index: {}]   ;;  %s865_s1 = inlined_call_operand.vmem [shape: f32[256,32], index: 1, kind: input, shape index: {}]   ;;  %s866_s2 = inlined_call_operand.vmem [shape: f32[256,32], index: 2, kind: input, shape index: {}]   ;;  %s867_s3 = inlined_call_operand.vmem [shape: f32[256,32], index: 3, kind: input, shape index: {}]   ;;  %s868_s4 = inlined_call_operand.hbm [shape: f32[256,128], index: 4, kind: output, shape index: {}]  }
   0x1   :  { %11 = vsyncpa [#allocation3 + $0x1], 0  ;;  %s698_s15 = smov 0   ;;  %s700_s16 = smov 0  }
   0x2   :  { %s702_s17 = smov 0   ;;  %s704_s18 = smov 0  }
   0x3 LB: > { %s719_s19 = sadd.s32 4294967295, %s665_s18   ;;  %s540_s20 = sadd.s32 4294967294, %s665_s18   ;;  %s665_s18 = sphi %s704_s18, %s874_s18   ;;  %s661_s17 = sphi %s702_s17, %s873_s17   ;;  %s657_s16 = sphi %s700_s16, %s872_s16   ;;  %s653_s15 = sphi %s698_s15, %s871_s15  }
   0x4   : > { %s723_s21 = sadd.s32 1, %s665_s18   ;;  %s128_s22 = sadd.s32 1, %s661_s17 }
   0x5   : > { %s125_s23 = ssub.s32 %s665_s18, %s723_s21  ;;  %p138_p0 = scmp.ne.s32.totalorder %s661_s17, %s657_s16 }
   0x6   : > { %p126_p1 = scmp.eq.s32.totalorder %s125_s23, 0  ;;  %p139_p2 = scmp.eq.s32.totalorder %s719_s19, 3 }
   0x7   : > { %p144_p3 = scmp.ne.s32.totalorder %s657_s16, %s653_s15  ;;  %p145_p4 = scmp.eq.s32.totalorder %s540_s20, 3 }
   0x8   : > { %s734_s24 = scalar_select %p126_p1, %s661_s17, %s128_s22  }
   0x9   : > { %p736_p5 = por %p139_p2, %p138_p0  ;;  %p740_p6 = por %p145_p4, %p144_p3 }
   0xa   : > { %p543_p7 = scmp.ge.s32.totalorder %s665_s18, 1  ;;  %p199_p8 = scmp.lt.s32.totalorder %s665_s18, 5 }
   0xc   : > { %p200_p9 = pnand %p543_p7, %p199_p8 }
   0xd   : > { %s545_s27 = sshll.u32 (!%p200_p9), %s719_s19, 3  ;;  %s667_s6 = smov (!%p200_p9), 32   ;;  %vm393_vm0 = vcmask (!%p200_p9), 261120   ;;  %vm402_vm1 = vcmask (!%p200_p9), 523264   ;;  %vm411_vm2 = vcmask (!%p200_p9), 785408  }
   0xe   : > { %203 = sbr.rel (%p200_p9) target bundleno = 200 (0xc8), region = 36  ;;  %p241_p10 = scmp.lt.s32.totalorder (!%p200_p9), %s545_s27, 31 }
   0xf   : > { %s668_s10 = smov (!%p200_p9), 64   ;;  %s669_s14 = smov (!%p200_p9), 96  }
  0x10   : > { %s558_s30 = sshll.u32 (!%p200_p9), %s719_s19, 10 }
  0x11   : > { %s811_s8 = scalar_lea.hbm (!%p200_p9), %s868_s4, %s558_s30 }
  0x15   : > { %s876_s27 = smov (!%p241_p10, %s545_s27), 31 }
  0x16   : > { %s747_s28 = sshll.u32 %s876_s27, 3  ;;  %s237_s27 = sand.u32 1, %s657_s16  }
  0x17   : > { %s250_s5 = scalar_lea.vmem %s865_s1, %s747_s28  ;;  %s256_s9 = scalar_lea.vmem %s866_s2, %s747_s28 }
  0x18   : > { %v275_v0 = vld [vmem:[%s250_s5 + $0x10] sm:$0xff]  ;;  %v273_v1 = vld [vmem:[%s250_s5] sm:$0xff]  ;;  %v276_v2 = vld [vmem:[%s250_s5 + $0x18] sm:$0xff]  ;;  %s262_s13 = scalar_lea.vmem %s867_s3, %s747_s28  ;;  %s765_s23 = scalar_lea.vmem %s864_s0, %s747_s28 }
  0x19   : > { %309 = vrot.lane.b32.xlu1 %v275_v0, %s667_s6  ;;  %305 = vrot.lane.b32.xlu0 %v273_v1, %s667_s6  ;;  %v274_v3 = vld [vmem:[%s250_s5 + $0x8] sm:$0xff]  ;;  %v277_v5 = vld [vmem:[%s250_s5 + $0x20] sm:$0xff]  ;;  %s544_s29 = sshll.u32 %s237_s27, 6  ;;  %s823_s19 = scalar_lea.sflag [#allocation3], %s237_s27 }
  0x1a   : > { %v278_v4 = vld [vmem:[%s250_s5 + $0x28] sm:$0xff]  ;;  %v280_v6 = vld [vmem:[%s250_s5 + $0x38] sm:$0xff]  ;;  %v279_v7 = vld [vmem:[%s250_s5 + $0x30] sm:$0xff]  ;;  %s780_s28 = scalar_lea.vmem [#allocation2], %s544_s29 }
  0x1b   : > { %v282_v8 = vld [vmem:[%s256_s9 + $0x8] sm:$0xff]  ;;  %v281_v9 = vld [vmem:[%s256_s9] sm:$0xff]  ;;  %v284_v10 = vld [vmem:[%s256_s9 + $0x18] sm:$0xff]  ;;  %s442_s5 = sshll.u32 %s780_s28, 4  ;;  %s813_s5 = int_to_ptr.vmem [resolvable:$true] %s442_s5 }
  0x1c   : > { %v283_v11 = vld [vmem:[%s256_s9 + $0x10] sm:$0xff]  ;;  %v286_v12 = vld [vmem:[%s256_s9 + $0x28] sm:$0xff]  ;;  %v285_v13 = vld [vmem:[%s256_s9 + $0x20] sm:$0xff] }
  0x1d   : > { %311 = vrot.lane.b32.xlu1 %v276_v2, %s667_s6  ;;  %307 = vrot.lane.b32.xlu0 %v274_v3, %s667_s6  ;;  %v288_v14 = vld [vmem:[%s256_s9 + $0x38] sm:$0xff]  ;;  %v287_v15 = vld [vmem:[%s256_s9 + $0x30] sm:$0xff]  ;;  %s603_s9 = scalar_lea.vmem %s813_s5, 1024 }
  0x1e   : > { %v290_v16 = vld [vmem:[%s262_s13 + $0x8] sm:$0xff]  ;;  %v289_v17 = vld [vmem:[%s262_s13] sm:$0xff]  ;;  %v292_v18 = vld [vmem:[%s262_s13 + $0x18] sm:$0xff]  ;;  %p604_p11 = scmp.ne.s32.totalorder %s813_s5, %s603_s9 }
  0x1f   : > { %v291_v19 = vld [vmem:[%s262_s13 + $0x10] sm:$0xff]  ;;  %v294_v20 = vld [vmem:[%s262_s13 + $0x28] sm:$0xff]  ;;  %v293_v21 = vld [vmem:[%s262_s13 + $0x20] sm:$0xff] }
  0x20   : > { %v296_v22 = vld [vmem:[%s262_s13 + $0x38] sm:$0xff]  ;;  %v295_v23 = vld [vmem:[%s262_s13 + $0x30] sm:$0xff]  ;;  %v265_v38 = vld [vmem:[%s765_s23] sm:$0xff]  ;;  %p605_p12 = pnand %p604_p11, %p736_p5 }
  0x21   : > { %315 = vrot.lane.b32.xlu1 %v278_v4, %s667_s6  ;;  %313 = vrot.lane.b32.xlu0 %v277_v5, %s667_s6  ;;  %v266_v39 = vld [vmem:[%s765_s23 + $0x8] sm:$0xff]  ;;  %v267_v44 = vld [vmem:[%s765_s23 + $0x10] sm:$0xff] }
  0x22   : > { %v268_v45 = vld [vmem:[%s765_s23 + $0x18] sm:$0xff]  ;;  %v270_v54 = vld [vmem:[%s765_s23 + $0x28] sm:$0xff]  ;;  %v269_v55 = vld [vmem:[%s765_s23 + $0x20] sm:$0xff]  ;;  %p606_p13 = pneg %p605_p12 }
  0x23   : > { %v272_v0 = vld [vmem:[%s765_s23 + $0x38] sm:$0xff]  ;;  %v271_v1 = vld [vmem:[%s765_s23 + $0x30] sm:$0xff] }
  0x25   : > { %319 = vrot.lane.b32.xlu1 %v280_v6, %s667_s6  ;;  %317 = vrot.lane.b32.xlu0 %v279_v7, %s667_s6 }
  0x29   : > { %339 = vrot.lane.b32.xlu1 %v282_v8, %s668_s10  ;;  %337 = vrot.lane.b32.xlu0 %v281_v9, %s668_s10 }
  0x2d   : > { %343 = vrot.lane.b32.xlu1 %v284_v10, %s668_s10  ;;  %341 = vrot.lane.b32.xlu0 %v283_v11, %s668_s10 }
  0x31   : > { %347 = vrot.lane.b32.xlu1 %v286_v12, %s668_s10  ;;  %345 = vrot.lane.b32.xlu0 %v285_v13, %s668_s10 }
  0x35   : > { %351 = vrot.lane.b32.xlu1 %v288_v14, %s668_s10  ;;  %349 = vrot.lane.b32.xlu0 %v287_v15, %s668_s10  ;;  %s670_s10 = smov [#allocation2]  }
  0x36   : > { %s607_s11 = sshll.u32 %s670_s10, 4  ;;  %s608_s11 = int_to_ptr.vmem [resolvable:$false] %s607_s11 }
  0x37   : > { %s609_s12 = scalar_lea.vmem %s608_s11, 2048  ;;  %p610_p0 = scmp.lt.s32.totalorder %s813_s5, %s608_s11 }
  0x38   : > { %p611_p1 = scmp.lt.s32.totalorder %s609_s12, %s603_s9 }
  0x39   : > { %371 = vrot.lane.b32.xlu1 %v290_v16, %s669_s14  ;;  %369 = vrot.lane.b32.xlu0 %v289_v17, %s669_s14 }
  0x3a   : > { %p612_p2 = por %p611_p1, %p610_p0 }
  0x3c   : > { %p613_p3 = pnand %p612_p2, %p606_p13 }
  0x3d   : > { %375 = vrot.lane.b32.xlu1 %v292_v18, %s669_s14  ;;  %373 = vrot.lane.b32.xlu0 %v291_v19, %s669_s14 }
  0x41   : > { %379 = vrot.lane.b32.xlu1 %v294_v20, %s669_s14  ;;  %377 = vrot.lane.b32.xlu0 %v293_v21, %s669_s14 }
  0x45   : > { %383 = vrot.lane.b32.xlu1 %v296_v22, %s669_s14  ;;  %381 = vrot.lane.b32.xlu0 %v295_v23, %s669_s14 }
  0x8b   : > { %v310_v24 = vpop.permute.xlu1 %309  ;;  %v306_v25 = vpop.permute.xlu0 %305 }
  0x8c   : > { %v394_v42 = vsel %vm393_vm0, %v265_v38, %v306_v25  ;;  %v396_v52 = vsel %vm393_vm0, %v267_v44, %v310_v24 }
  0x8f   : > { %v312_v26 = vpop.permute.xlu1 %311  ;;  %v308_v27 = vpop.permute.xlu0 %307 }
  0x90   : > { %v395_v43 = vsel %vm393_vm0, %v266_v39, %v308_v27  ;;  %v397_v53 = vsel %vm393_vm0, %v268_v45, %v312_v26 }
  0x93   : > { %v316_v28 = vpop.permute.xlu1 %315  ;;  %v314_v29 = vpop.permute.xlu0 %313 }
  0x94   : > { %v399_v62 = vsel %vm393_vm0, %v270_v54, %v316_v28  ;;  %v398_v63 = vsel %vm393_vm0, %v269_v55, %v314_v29 }
  0x97   : > { %v320_v30 = vpop.permute.xlu1 %319  ;;  %v318_v31 = vpop.permute.xlu0 %317 }
  0x98   : > { %v401_v8 = vsel %vm393_vm0, %v272_v0, %v320_v30  ;;  %v400_v9 = vsel %vm393_vm0, %v271_v1, %v318_v31 }
  0x9b   : > { %v340_v32 = vpop.permute.xlu1 %339  ;;  %v338_v33 = vpop.permute.xlu0 %337 }
  0x9c   : > { %v404_v46 = vsel %vm402_vm1, %v395_v43, %v340_v32  ;;  %v403_v47 = vsel %vm402_vm1, %v394_v42, %v338_v33 }
  0x9f   : > { %v344_v34 = vpop.permute.xlu1 %343  ;;  %v342_v35 = vpop.permute.xlu0 %341 }
  0xa0   : > { %v406_v56 = vsel %vm402_vm1, %v397_v53, %v344_v34  ;;  %v405_v57 = vsel %vm402_vm1, %v396_v52, %v342_v35 }
  0xa3   : > { %v348_v36 = vpop.permute.xlu1 %347  ;;  %v346_v37 = vpop.permute.xlu0 %345 }
  0xa4   : > { %v408_v2 = vsel %vm402_vm1, %v399_v62, %v348_v36  ;;  %v407_v3 = vsel %vm402_vm1, %v398_v63, %v346_v37 }
  0xa7   : > { %v352_v40 = vpop.permute.xlu1 %351  ;;  %v350_v41 = vpop.permute.xlu0 %349 }
  0xa8   : > { %v410_v10 = vsel %vm402_vm1, %v401_v8, %v352_v40  ;;  %v409_v11 = vsel %vm402_vm1, %v400_v9, %v350_v41 }
  0xab   : > { %v372_v48 = vpop.permute.xlu1 %371  ;;  %v370_v49 = vpop.permute.xlu0 %369 }
  0xac   : > { %v413_v50 = vsel %vm411_vm2, %v404_v46, %v372_v48  ;;  %v412_v51 = vsel %vm411_vm2, %v403_v47, %v370_v49 }
  0xad   : > { %421 = vst [vmem:[%s780_s28 + $0x8] sm:$0xff] %v413_v50  ;;  %420 = vst [vmem:[%s780_s28] sm:$0xff] %v412_v51 }
  0xaf   : > { %v376_v58 = vpop.permute.xlu1 %375  ;;  %v374_v59 = vpop.permute.xlu0 %373 }
  0xb0   : > { %v415_v60 = vsel %vm411_vm2, %v406_v56, %v376_v58  ;;  %v414_v61 = vsel %vm411_vm2, %v405_v57, %v374_v59 }
  0xb1   : > { %423 = vst [vmem:[%s780_s28 + $0x18] sm:$0xff] %v415_v60  ;;  %422 = vst [vmem:[%s780_s28 + $0x10] sm:$0xff] %v414_v61 }
  0xb3   : > { %v380_v4 = vpop.permute.xlu1 %379  ;;  %v378_v5 = vpop.permute.xlu0 %377 }
  0xb4   : > { %v417_v6 = vsel %vm411_vm2, %v408_v2, %v380_v4  ;;  %v416_v7 = vsel %vm411_vm2, %v407_v3, %v378_v5 }
  0xb5   : > { %425 = vst [vmem:[%s780_s28 + $0x28] sm:$0xff] %v417_v6  ;;  %424 = vst [vmem:[%s780_s28 + $0x20] sm:$0xff] %v416_v7 }
  0xb7   : > { %v384_v12 = vpop.permute.xlu1 %383  ;;  %v382_v13 = vpop.permute.xlu0 %381 }
  0xb8   : > { %v419_v14 = vsel %vm411_vm2, %v410_v10, %v384_v12  ;;  %v418_v15 = vsel %vm411_vm2, %v409_v11, %v382_v13 }
  0xb9   : > { %427 = vst [vmem:[%s780_s28 + $0x38] sm:$0xff] %v419_v14  ;;  %426 = vst [vmem:[%s780_s28 + $0x30] sm:$0xff] %v418_v15 }
  0xba   : > { %616 = shalt.err (!%p613_p3)
}
  0xbb   : > { %s617_s13 = scalar_lea.hbm %s811_s8, 1024  ;;  %s621_s22 = scalar_lea.hbm %s868_s4, 4096 }
  0xbc   : > { %p618_p4 = scmp.ne.s32.totalorder %s811_s8, %s617_s13  ;;  %p622_p9 = scmp.lt.u32.totalorder %s811_s8, %s868_s4 }
  0xbd   : > { %p623_p10 = scmp.lt.u32.totalorder %s621_s22, %s617_s13  ;;  %p625_p12 = scmp.lt.u32.totalorder %s617_s13, %s811_s8 }
  0xbe   : > { %p619_p7 = pnand %p618_p4, %p736_p5 }
  0xbf   : > { %p624_p11 = por %p623_p10, %p622_p9 }
  0xc0   : > { %p620_p8 = pneg %p619_p7 }
  0xc1   : > { %p626_p13 = por %p625_p12, %p624_p11 }
  0xc3   : > { %p627_p0 = pnand %p626_p13, %p620_p8 }
  0xc5   : > { %630 = shalt.err (!%p627_p0)
}
  0xc6   : > { %s671_s29 = smov 128   ;;  %s672_s28 = smov 8  }
  0xc7   : > { %559 = dma.vmem_to_hbm [thread:$0]  (%p736_p5), %s813_s5, 1024, %s811_s8, %s823_s19, %s671_s29, %s671_s29, %s672_s28  }
  0xc8 PF: > { %p565_p1 = scmp.ge.s32.totalorder %s665_s18, 2  ;;  %s457_s30 = sand.u32 1, %s653_s15  }
  0xc9   : > { %s458_s6 = scalar_lea.sflag [#allocation3], %s457_s30 }
  0xca   : > { %p562_p2 = pnand %p565_p1, %p740_p6 }
  0xcc   : > { %648 = dma.done.wait (!%p562_p2), %s458_s6, 1024  }
  0xcd   : > { %650 = vsyncadd (!%p562_p2), %s458_s6, 4294966272  ;;  %p14_p3 = scmp.ge.s32.totalorder %s723_s21, 6   ;;  %s871_s15 = smov %s657_s16 }
  0xce   : > { %s872_s16 = smov %s661_s17  ;;  %s873_s17 = smov %s734_s24 }
  0xcf   : > { %s874_s18 = smov %s723_s21  ;;  %16 = sbr.rel (!%p14_p3) target bundleno = 3 (0x3), region = 80 }
  0xd6   :  { %463 = vsyncpa [#allocation3], 1 }
  0xd7   :  { %465 = vsyncpa [#allocation3 + $0x1], 1 }

</bundles_post_ra>
